<compile_context>
chip_gen: v7x
topology: tpu7x:2x2x1
jax: 0.10.0
libtpu: 0.0.40
codegen_flags: <defaults>
</compile_context>

<pallas_src>
import math
import functools

import jax
import jax.numpy as jnp
from jax.experimental import pallas as pl
from jax.experimental.pallas import tpu as pltpu


def _round_up(x, m):
    return (x + m - 1) // m * m


# ---------------------------------------------------------------------------
# Kernel
# ---------------------------------------------------------------------------
def _equal_linear_kernel(x_ref, w_ref, b_ref, o_ref, acc_ref, *,
                         scale, lr_mul, activate, negative_slope, act_scale):
    k = pl.program_id(2)

    # x tile (tm, tk) @ w tile (tk, tn) -> canonical contraction, no transpose.
    prod = jnp.dot(x_ref[...], w_ref[...], preferred_element_type=jnp.float32)

    @pl.when(k == 0)
    def _():
        acc_ref[...] = prod            # init with first product (saves a zero pass)

    @pl.when(k != 0)
    def _():
        acc_ref[...] += prod

    @pl.when(k == pl.num_programs(2) - 1)
    def _():
        # Epilogue (f32): scalar scale on the accumulator (O(tm*tn) instead of
        # O(Cout*Cin) on W), bias, optional fused leaky-relu, single final cast.
        out = acc_ref[...] * scale + b_ref[...].astype(jnp.float32) * lr_mul
        if activate:
            out = jnp.where(out >= 0.0, out, out * negative_slope) * act_scale
        o_ref[...] = out.astype(o_ref.dtype)


# ---------------------------------------------------------------------------
# One-time parameter preparation (pad + transpose + cast; hoisted out of the
# per-forward path).
# ---------------------------------------------------------------------------
def prepare_equal_linear_params(weight, bias, *, lr_mul=1.0,
                                tn=512, tk=1024,
                                param_dtype=jnp.bfloat16):
    """weight: (out_channel, in_channel) torch layout; bias: (out_channel,)."""
    out_channel, in_channel = weight.shape

    n0 = _round_up(out_channel, 128)
    k0 = _round_up(in_channel, 128)
    tn = min(tn, n0)
    tk = min(tk, k0)

    # Megacore: if the N axis would be a single block, split it in two so both
    # TensorCores (v7x) get work via the "parallel" grid axis.
    if n0 == tn and n0 >= 256 and (n0 // 2) % 128 == 0:
        tn = n0 // 2

    N = _round_up(n0, tn)
    K = _round_up(k0, tk)

    w_p = weight
    if N != out_channel or K != in_channel:
        w_p = jnp.pad(weight, ((0, N - out_channel), (0, K - in_channel)))
    # (K, N) layout, narrow dtype for the MXU. Zero padding contributes nothing.
    w_t = jnp.transpose(w_p).astype(param_dtype)

    b_p = bias if N == out_channel else jnp.pad(bias, (0, N - out_channel))
    b_p = b_p.reshape(1, N).astype(jnp.float32)

    return {
        "w_t": w_t, "b": b_p,
        "in_channel": in_channel, "out_channel": out_channel,
        "K": K, "N": N, "tn": tn, "tk": tk,
        "lr_mul": float(lr_mul),
        "scale": 1.0 / math.sqrt(in_channel) * float(lr_mul),
    }


# ---------------------------------------------------------------------------
# Forward
# ---------------------------------------------------------------------------
def equal_linear_apply(x, params, *, activate=False, tm=512,
                       compute_dtype=jnp.bfloat16):
    """x: (batch, in_channel); params from prepare_equal_linear_params."""
    batch, in_channel = x.shape
    assert in_channel == params["in_channel"]

    K, N = params["K"], params["N"]
    tn, tk = params["tn"], params["tk"]

    # tm: clamp to the problem, aligned to 16 sublanes (bf16 packing).
    tm = _round_up(min(tm, _round_up(batch, 16)), 16)
    M = _round_up(batch, tm)

    x_p = x
    if M != batch or K != in_channel:
        x_p = jnp.pad(x, ((0, M - batch), (0, K - in_channel)))
    x_p = x_p.astype(compute_dtype)

    out_dtype = jnp.float16 if activate else x.dtype   # torch .half() parity

    kernel = functools.partial(
        _equal_linear_kernel,
        scale=params["scale"],
        lr_mul=params["lr_mul"],
        activate=activate,
        negative_slope=0.2,
        act_scale=math.sqrt(2.0),
    )

    grid = (M // tm, N // tn, K // tk)

    out_p = pl.pallas_call(
        kernel,
        out_shape=jax.ShapeDtypeStruct((M, N), out_dtype),
        grid_spec=pltpu.PrefetchScalarGridSpec(
            num_scalar_prefetch=0,
            grid=grid,
            in_specs=[
                pl.BlockSpec((tm, tk), lambda i, j, k: (i, k)),   # x    (M, K)
                pl.BlockSpec((tk, tn), lambda i, j, k: (k, j)),   # W^T  (K, N)
                pl.BlockSpec((1, tn), lambda i, j, k: (0, j)),    # bias (1, N)
            ],
            out_specs=pl.BlockSpec((tm, tn), lambda i, j, k: (i, j)),
            scratch_shapes=[pltpu.VMEM((tm, tn), jnp.float32)],
        ),
        compiler_params=pltpu.CompilerParams(
            dimension_semantics=("parallel", "parallel", "arbitrary"),
            vmem_limit_bytes=32 * 1024 * 1024),
    )(x_p, params["w_t"], params["b"])

    return out_p[:batch, : params["out_channel"]]


def equal_linear(x, weight, bias, *, lr_mul=1.0, activate=False,
                 tm=512, tn=512, tk=1024):
    """Convenience wrapper (prep + apply). For repeated forwards, call
    prepare_equal_linear_params once and reuse the result."""
    params = prepare_equal_linear_params(weight, bias, lr_mul=lr_mul, tn=tn, tk=tk)
    return equal_linear_apply(x, params, activate=activate, tm=tm)


# ---------------------------------------------------------------------------
# Reference (mirrors the kernel's bf16-operand / f32-accumulate numerics)
# ---------------------------------------------------------------------------
def _reference(x, weight, bias, *, lr_mul=1.0, activate=False):
    in_channel = x.shape[-1]
    scale = 1.0 / math.sqrt(in_channel) * lr_mul
    xb = x.astype(jnp.bfloat16).astype(jnp.float32)
    wb = weight.astype(jnp.bfloat16).astype(jnp.float32)
    out = jnp.dot(xb, wb.T) * scale + bias.astype(jnp.float32)[None, :] * lr_mul
    if activate:
        out = jnp.where(out >= 0.0, out, out * 0.2) * math.sqrt(2.0)
        return out.astype(jnp.float16)
    return out.astype(x.dtype)


if __name__ == "__main__":
    key = jax.random.PRNGKey(0)
    kx, kw, kx2, kw2 = jax.random.split(key, 4)

    # --- small case (single tile per axis, defaults) -----------------------
    batch, in_channel, out_channel = 8, 32, 16
    lr_mul, bias_init = 1.0, 0.0

    x = jax.random.normal(kx, (batch, in_channel), dtype=jnp.float32)
    weight = jax.random.normal(kw, (out_channel, in_channel), dtype=jnp.float32) / lr_mul
    bias = jnp.full((out_channel,), bias_init, dtype=jnp.float32)

    out_plain = jax.block_until_ready(
        equal_linear(x, weight, bias, lr_mul=lr_mul, activate=False))
    ref_plain = _reference(x, weight, bias, lr_mul=lr_mul, activate=False)
    assert out_plain.shape == (batch, out_channel)
    assert out_plain.dtype == x.dtype
    assert jnp.allclose(out_plain, ref_plain, atol=2e-3, rtol=2e-3)

    out_act = jax.block_until_ready(
        equal_linear(x, weight, bias, lr_mul=lr_mul, activate=True))
    ref_act = _reference(x, weight, bias, lr_mul=lr_mul, activate=True)
    assert out_act.dtype == jnp.float16
    assert jnp.allclose(out_act.astype(jnp.float32),
                        ref_act.astype(jnp.float32), atol=1e-2, rtol=1e-2)

    # --- second case: >1 grid on N and K, unaligned shapes + padding -------
    batch2, in2, out2 = 16, 160, 272
    lr_mul2, bias_init2 = 0.5, 0.1
    x2 = jax.random.normal(kx2, (batch2, in2), dtype=jnp.float32)
    w2 = jax.random.normal(kw2, (out2, in2), dtype=jnp.float32) / lr_mul2
    b2 = jnp.full((out2,), bias_init2, dtype=jnp.float32)

    params2 = prepare_equal_linear_params(w2, b2, lr_mul=lr_mul2, tn=128, tk=128)

    out2_plain = jax.block_until_ready(
        equal_linear_apply(x2, params2, activate=False, tm=16))
    ref2_plain = _reference(x2, w2, b2, lr_mul=lr_mul2, activate=False)
    assert out2_plain.shape == (batch2, out2)
    assert jnp.allclose(out2_plain, ref2_plain, atol=5e-3, rtol=5e-3)

    out2_act = jax.block_until_ready(
        equal_linear_apply(x2, params2, activate=True, tm=16))
    ref2_act = _reference(x2, w2, b2, lr_mul=lr_mul2, activate=True)
    assert out2_act.dtype == jnp.float16
    assert jnp.allclose(out2_act.astype(jnp.float32),
                        ref2_act.astype(jnp.float32), atol=1e-2, rtol=1e-2)

    # --- megacore heuristic check: Cout=512 splits N into 2 blocks ---------
    p3 = prepare_equal_linear_params(
        jax.random.normal(kw, (512, 512), dtype=jnp.float32),
        jnp.zeros((512,), dtype=jnp.float32), lr_mul=1.0)
    assert p3["N"] // p3["tn"] >= 2
    x3 = jax.random.normal(kx, (32, 512), dtype=jnp.float32)
    out3 = jax.block_until_ready(equal_linear_apply(x3, p3, activate=False))
    ref3 = _reference(x3, jax.random.normal(kw, (512, 512), dtype=jnp.float32),
                      jnp.zeros((512,), dtype=jnp.float32))
    assert jnp.allclose(out3, ref3, atol=2e-2, rtol=2e-2)

    print("KERNEL_OK")
</pallas_src>

<mosaic_0001>
module attributes {stable_mosaic.version = 11 : i64} {
  func.func @_equal_linear_kernel(%arg0: i32, %arg1: i32, %arg2: i32, %arg3: memref<16x128xbf16, #tpu.memory_space<vmem>>, %arg4: memref<128x128xbf16, #tpu.memory_space<vmem>>, %arg5: memref<1x128xf32, #tpu.memory_space<vmem>>, %arg6: memref<16x128xf32, #tpu.memory_space<vmem>>, %arg7: memref<16x128xf32, #tpu.memory_space<vmem>>) attributes {dimension_semantics = [#tpu.dimension_semantics<parallel>, #tpu.dimension_semantics<parallel>, #tpu.dimension_semantics<arbitrary>], iteration_bounds = array<i64: 1, 1, 1>, scalar_prefetch = 0 : i64, scratch_operands = 1 : i64, tpu.core_type = #tpu.core_type<tc>, window_params = [{transform_indices = @transform_0, window_bounds = array<i64: 16, 128>}, {transform_indices = @transform_1, window_bounds = array<i64: 128, 128>}, {transform_indices = @transform_2, window_bounds = array<i64: 1, 128>}, {transform_indices = @transform_3, window_bounds = array<i64: 16, 128>}]} {
    %c0 = arith.constant 0 : index
    %c0_0 = arith.constant 0 : index
    %0 = vector.load %arg3[%c0, %c0_0] : memref<16x128xbf16, #tpu.memory_space<vmem>>, vector<16x128xbf16>
    %c0_1 = arith.constant 0 : index
    %c0_2 = arith.constant 0 : index
    %1 = vector.load %arg4[%c0_1, %c0_2] : memref<128x128xbf16, #tpu.memory_space<vmem>>, vector<128x128xbf16>
    %cst = arith.constant dense<0.000000e+00> : vector<16x128xf32>
    %2 = tpu.matmul %0, %1, %cst {dimension_numbers = #tpu.dot_dimension_numbers<[1], [0], [0], [1], [0, 0, 1, 1], [], []>} : vector<16x128xbf16>, vector<128x128xbf16>, vector<16x128xf32> -> vector<16x128xf32>
    %c0_i32 = arith.constant 0 : i32
    %3 = arith.cmpi eq, %arg2, %c0_i32 : i32
    %4 = arith.extui %3 : i1 to i32
    %c0_i32_3 = arith.constant 0 : i32
    %5 = arith.cmpi ne, %4, %c0_i32_3 : i32
    scf.if %5 {
      %c0_8 = arith.constant 0 : index
      %c0_9 = arith.constant 0 : index
      %12 = vector.load %arg7[%c0_8, %c0_9] : memref<16x128xf32, #tpu.memory_space<vmem>>, vector<16x128xf32>
      tpu.vector_store %arg7[%c0_8, %c0_9], %2 {strides = array<i32>} : memref<16x128xf32, #tpu.memory_space<vmem>>, vector<16x128xf32>,
    } else {
    }
    %c0_i32_4 = arith.constant 0 : i32
    %6 = arith.cmpi ne, %arg2, %c0_i32_4 : i32
    %7 = arith.extui %6 : i1 to i32
    %c0_i32_5 = arith.constant 0 : i32
    %8 = arith.cmpi ne, %7, %c0_i32_5 : i32
    scf.if %8 {
      %c0_8 = arith.constant 0 : index
      %c0_9 = arith.constant 0 : index
      %12 = vector.load %arg7[%c0_8, %c0_9] : memref<16x128xf32, #tpu.memory_space<vmem>>, vector<16x128xf32>
      %13 = arith.addf %12, %2 : vector<16x128xf32>
      %c0_10 = arith.constant 0 : index
      %c0_11 = arith.constant 0 : index
      %14 = vector.load %arg7[%c0_10, %c0_11] : memref<16x128xf32, #tpu.memory_space<vmem>>, vector<16x128xf32>
      tpu.vector_store %arg7[%c0_10, %c0_11], %13 {strides = array<i32>} : memref<16x128xf32, #tpu.memory_space<vmem>>, vector<16x128xf32>,
    } else {
    }
    %c0_i32_6 = arith.constant 0 : i32
    %9 = arith.cmpi eq, %arg2, %c0_i32_6 : i32
    %10 = arith.extui %9 : i1 to i32
    %c0_i32_7 = arith.constant 0 : i32
    %11 = arith.cmpi ne, %10, %c0_i32_7 : i32
    scf.if %11 {
      %c0_8 = arith.constant 0 : index
      %c0_9 = arith.constant 0 : index
      %12 = vector.load %arg7[%c0_8, %c0_9] : memref<16x128xf32, #tpu.memory_space<vmem>>, vector<16x128xf32>
      %cst_10 = arith.constant 0.176776692 : f32
      %13 = vector.broadcast %cst_10 : f32 to vector<16x128xf32>
      %14 = arith.mulf %12, %13 : vector<16x128xf32>
      %c0_11 = arith.constant 0 : index
      %c0_12 = arith.constant 0 : index
      %15 = vector.load %arg5[%c0_11, %c0_12] : memref<1x128xf32, #tpu.memory_space<vmem>>, vector<1x128xf32>
      %cst_13 = arith.constant 1.000000e+00 : f32
      %16 = vector.broadcast %cst_13 : f32 to vector<1x128xf32>
      %17 = arith.mulf %15, %16 : vector<1x128xf32>
      %18 = vector.broadcast %17 : vector<1x128xf32> to vector<16x128xf32>
      %19 = arith.addf %14, %18 : vector<16x128xf32>
      %c0_14 = arith.constant 0 : index
      %c0_15 = arith.constant 0 : index
      %20 = vector.load %arg6[%c0_14, %c0_15] : memref<16x128xf32, #tpu.memory_space<vmem>>, vector<16x128xf32>
      tpu.vector_store %arg6[%c0_14, %c0_15], %19 {strides = array<i32>} : memref<16x128xf32, #tpu.memory_space<vmem>>, vector<16x128xf32>,
    } else {
    }
    return
  }
  func.func @transform_0(%arg0: i32, %arg1: i32, %arg2: i32) -> (i32, i32) {
    %c0_i32 = arith.constant 0 : i32
    return %arg0, %arg2 : i32, i32
  }
  func.func @transform_1(%arg0: i32, %arg1: i32, %arg2: i32) -> (i32, i32) {
    %c0_i32 = arith.constant 0 : i32
    return %arg2, %arg1 : i32, i32
  }
  func.func @transform_2(%arg0: i32, %arg1: i32, %arg2: i32) -> (i32, i32) {
    %c0_i32 = arith.constant 0 : i32
    %c0_i32_0 = arith.constant 0 : i32
    return %c0_i32, %arg1 : i32, i32
  }
  func.func @transform_3(%arg0: i32, %arg1: i32, %arg2: i32) -> (i32, i32) {
    %c0_i32 = arith.constant 0 : i32
    return %arg0, %arg1 : i32, i32
  }
}

</mosaic_0001>

<bundles_post_ra>
// kernel: tpu_custom_call.1
= control target key start
LH: loop header
LB: loop body
LE: loop exit
PB: predicated region body
PF: predicated region fallthrough
CT: control target
= control target key end

     0   :  { %8 = vsyncpa [#allocation4], 0  ;;  %s406_s0 = inlined_call_operand.hbm [shape: bf16[16,128], index: 0, kind: input, shape index: {}]   ;;  %s407_s1 = inlined_call_operand.hbm [shape: bf16[128,128], index: 1, kind: input, shape index: {}]   ;;  %s408_s2 = inlined_call_operand.vmem [shape: f32[1,128], index: 2, kind: input, shape index: {}]   ;;  %s409_s3 = inlined_call_operand.hbm [shape: f32[16,128], index: 3, kind: output, shape index: {}]  }
   0x1   :  { %9 = vsyncpa [#allocation7], 0 }
   0x2   :  { %10 = vsyncpa [#allocation5], 0  ;;  %s338_s12 = smov [#allocation3]   ;;  %s266_s16 = scalar_lea.hbm %s406_s0, 128 }
   0x3   :  { %s16_s13 = sshll.u32 %s338_s12, 4  ;;  %p267_p0 = scmp.ne.s32.totalorder %s406_s0, %s266_s16  ;;  %s17_s13 = int_to_ptr.vmem [resolvable:$true] %s16_s13 }
   0x4   :  { %p270_p1 = scmp.lt.u32.totalorder %s266_s16, %s406_s0 }
   0x6   :  { %p272_p2 = pnand %p270_p1, %p267_p0 }
   0x8   :  { %275 = shalt.err (!%p272_p2)
}
   0x9   :  { %s276_s21 = scalar_lea.vmem %s17_s13, 128  ;;  %p281_p4 = scmp.lt.s32.totalorder %s17_s13, %s17_s13 }
   0xa   :  { %p277_p3 = scmp.ne.s32.totalorder %s17_s13, %s276_s21  ;;  %p282_p5 = scmp.lt.s32.totalorder %s276_s21, %s276_s21 }
   0xc   :  { %p283_p6 = por %p282_p5, %p281_p4 }
   0xe   :  { %p284_p7 = pnand %p283_p6, %p277_p3 }
  0x10   :  { %287 = shalt.err (!%p284_p7)
}
  0x11   :  { %s339_s22 = smov 64   ;;  %s340_s23 = smov 4  }
  0x12   :  { %22 = dma.hbm_to_vmem [thread:$0]  %s406_s0, 128, %s17_s13, [#allocation4], %s339_s22, %s339_s22, %s340_s23  }
  0x13   :  { %s341_s26 = smov [#allocation6]   ;;  %s288_s30 = scalar_lea.hbm %s407_s1, 1024 }
  0x14   :  { %s28_s27 = sshll.u32 %s341_s26, 4  ;;  %p289_p8 = scmp.ne.s32.totalorder %s407_s1, %s288_s30  ;;  %s29_s27 = int_to_ptr.vmem [resolvable:$true] %s28_s27 }
  0x15   :  { %p292_p9 = scmp.lt.u32.totalorder %s288_s30, %s407_s1 }
  0x17   :  { %p294_p10 = pnand %p292_p9, %p289_p8 }
  0x19   :  { %297 = shalt.err (!%p294_p10)
}
  0x1a   :  { %s298_s8 = scalar_lea.vmem %s29_s27, 1024  ;;  %p303_p12 = scmp.lt.s32.totalorder %s29_s27, %s29_s27 }
  0x1b   :  { %p299_p11 = scmp.ne.s32.totalorder %s29_s27, %s298_s8  ;;  %p304_p13 = scmp.lt.s32.totalorder %s298_s8, %s298_s8 }
  0x1d   :  { %p305_p0 = por %p304_p13, %p303_p12 }
  0x1f   :  { %p306_p1 = pnand %p305_p0, %p299_p11 }
  0x21   :  { %309 = shalt.err (!%p306_p1)
}
  0x22   :  { %34 = dma.hbm_to_vmem [thread:$0]  %s407_s1, 1024, %s29_s27, [#allocation7], %s339_s22, %s339_s22, %s340_s23  }
  0x23   :  { %332 = dma.done.wait [#allocation4], 128  }
  0x24   :  { %333 = vsyncadd [#allocation4], 4294967168 }
  0x25   :  { %334 = dma.done.wait [#allocation7], 1024  }
  0x26   :  { %335 = vsyncadd [#allocation7], 4294966272  ;;  %v342_v0 = vmov 0.0   ;;  %vm343_vm0 = vmmov 0   ;;  %v257_v1 = vld [vmem:[#allocation6] sm:$0xff]   ;;  %v258_v2 = vld [vmem:[#allocation6 + $0x8] sm:$0xff]  }
  0x27   :  { %228 = vmatprep.subr.bf16.mxu0 %v342_v0  ;;  %244 = vmatprep.mubr.msk.bf16.mxu0 %vm343_vm0, %v342_v0  ;;  %v259_v3 = vld [vmem:[#allocation6 + $0x10] sm:$0xff]   ;;  %v260_v4 = vld [vmem:[#allocation6 + $0x18] sm:$0xff]   ;;  %v261_v5 = vld [vmem:[#allocation6 + $0x20] sm:$0xff]   ;;  %s344_s11 = smov [#allocation8]  }
  0x28   :  { %229 = vmatpush3.bf16.msra.mxu0 %v257_v1  ;;  %v262_v6 = vld [vmem:[#allocation6 + $0x28] sm:$0xff]   ;;  %v263_v7 = vld [vmem:[#allocation6 + $0x30] sm:$0xff]   ;;  %v264_v8 = vld [vmem:[#allocation6 + $0x38] sm:$0xff]   ;;  %s196_s12 = sshll.u32 %s344_s11, 4  ;;  %s197_s12 = int_to_ptr.vmem [resolvable:$true] %s196_s12 }
  0x29   :  { %230 = vmatprep.subr.bf16.mxu0 %v342_v0  ;;  %v265_v9 = vld [vmem:[#allocation3] sm:$0xff]   ;;  %s310_s13 = scalar_lea.vmem %s197_s12, 256  ;;  %p315_p3 = scmp.lt.s32.totalorder %s197_s12, %s197_s12 }
  0x2a   :  { %v218_v11 = vld [vmem:[%s408_s2] ss:$0 sm:$0xff]  ;;  %p311_p2 = scmp.ne.s32.totalorder %s197_s12, %s310_s13  ;;  %p316_p4 = scmp.lt.s32.totalorder %s310_s13, %s310_s13 }
  0x2c   :  { %231 = vmatpush3.bf16.msra.mxu0 %v258_v2  ;;  %p317_p5 = por %p316_p4, %p315_p3 }
  0x2d   :  { %232 = vmatprep.subr.bf16.mxu0 %v342_v0 }
  0x2e   :  { %p318_p6 = pnand %p317_p5, %p311_p2 }
  0x30   :  { %233 = vmatpush3.bf16.msra.mxu0 %v259_v3 }
  0x31   :  { %234 = vmatprep.subr.bf16.mxu0 %v342_v0 }
  0x34   :  { %235 = vmatpush3.bf16.msra.mxu0 %v260_v4 }
  0x35   :  { %236 = vmatprep.subr.bf16.mxu0 %v342_v0 }
  0x38   :  { %237 = vmatpush3.bf16.msra.mxu0 %v261_v5 }
  0x39   :  { %238 = vmatprep.subr.bf16.mxu0 %v342_v0 }
  0x3c   :  { %239 = vmatpush3.bf16.msra.mxu0 %v262_v6 }
  0x3d   :  { %240 = vmatprep.subr.bf16.mxu0 %v342_v0 }
  0x40   :  { %241 = vmatpush3.bf16.msra.mxu0 %v263_v7 }
  0x41   :  { %242 = vmatprep.subr.bf16.mxu0 %v342_v0 }
  0x44   :  { %243 = vmatpush3.bf16.msra.mxu0 %v264_v8 }
  0x47   :  { %245 = vmatmul.mubr.bf16.vlgmr.msra.gmra.mrb[0].mxu0 %v265_v9 }
 0x11a   :  { %v150_v10 = vpop.f32.mrb[0].mxu0 }
 0x11b   :  { %v178_v12 = vmul.f32 0.17677669, %v150_v10  ;;  %v246_v13 = vpop.f32.mrb[1].mxu0 }
 0x11c   :  { %v153_v14 = vpop.f32.mrb[2].mxu0 }
 0x11d   :  { %v187_v15 = vadd.f32 %v218_v11, %v178_v12  ;;  %v179_v16 = vmul.f32 0.17677669, %v153_v14  ;;  %v247_v17 = vpop.f32.mrb[3].mxu0 }
 0x11f   :  { %189 = vst [vmem:[#allocation8] sm:$0xff] %v187_v15  ;;  %v188_v18 = vadd.f32 %v218_v11, %v179_v16 }
 0x121   :  { %190 = vst [vmem:[#allocation8 + $0x8] sm:$0xff] %v188_v18 }
 0x122   :  { %321 = shalt.err (!%p318_p6)
}
 0x123   :  { %s322_s15 = scalar_lea.hbm %s409_s3, 256 }
 0x124   :  { %p323_p7 = scmp.ne.s32.totalorder %s409_s3, %s322_s15  ;;  %p326_p8 = scmp.lt.u32.totalorder %s322_s15, %s409_s3 }
 0x126   :  { %p328_p9 = pnand %p326_p8, %p323_p7 }
 0x128   :  { %331 = shalt.err (!%p328_p9)
}
 0x129   :  { %s345_s20 = smov 128   ;;  %s346_s21 = smov 8  }
 0x12a   :  { %202 = dma.vmem_to_hbm [thread:$0]  %s197_s12, 256, %s409_s3, [#allocation5], %s345_s20, %s345_s20, %s346_s21  }
 0x12b   :  { %336 = dma.done.wait [#allocation5], 256  }
 0x12c   :  { %337 = vsyncadd [#allocation5], 4294967040 }
 0x12d   :  { %206 = vsyncpa [#allocation4], 1 }
 0x12e   :  { %207 = vsyncpa [#allocation7], 1 }
 0x12f   :  { %208 = vsyncpa [#allocation5], 1 }

</bundles_post_ra>
